<compile_context>
chip_gen: v6e
topology: v6e:2x2x1
jax: 0.10.0
libtpu: 0.0.40
codegen_flags: <defaults>
</compile_context>

<pallas_src>
import functools

import jax
import jax.numpy as jnp
from jax.experimental import pallas as pl
from jax.experimental.pallas import tpu as pltpu


def _apply_activation(h, activation):
    if activation == "relu":
        return jnp.maximum(h, 0.0)
    if activation == "gelu":
        # TODO(synk): torch nn.GELU defaults to exact erf-GELU; tanh approximation used here.
        return jax.nn.gelu(h, approximate=True)
    raise NotImplementedError(f"activation {activation} is not implemented")


def _vmem_capacity_bytes():
    try:
        return int(pltpu.get_tpu_info().vmem_capacity_bytes)
    except Exception:
        pass
    # Fallback keyed off the device kind: v7x has 64 MiB per TensorCore, earlier
    # generations (v4 / v5e / v6e) have 128 MiB.
    try:
        kind = jax.devices()[0].device_kind.lower()
        if "v7" in kind or "7x" in kind:
            return 64 << 20
        return 128 << 20
    except Exception:
        return 64 << 20


def _compiler_params(buffer_bytes, semantics, cap):
    # buffer_bytes already includes the buffering factor of the pipelined x
    # blocks (in + out); add a little headroom for weights / compiler scratch.
    need = int(buffer_bytes) + (4 << 20)
    vlim = max(32 << 20, need)
    vlim = min(vlim, cap - (4 << 20))
    return pltpu.CompilerParams(dimension_semantics=semantics,
                                vmem_limit_bytes=int(vlim))


def _mlp_gate(mean_row, w1_ref, b1_ref, w2_ref, b2_ref, activation):
    """mean_row: (1, F) f32 -> sigmoid gate of shape (F, 1) (F on sublanes).

    The two 1x1 convolutions act on an F-vector per batch, i.e. a tiny MLP.
    Evaluated as broadcast-multiply + reduce (VPU/XLU; MXU gives nothing at
    these sizes), oriented so the gate comes out with F on the sublane axis,
    matching the (.., F, T) activation tiles (no relayout in the excitation).
    """
    # layer 1: h[h] = sum_f W1[h, f] * mean[f] + b1[h]        -> (H, 1)
    h = jnp.sum(w1_ref[...] * mean_row, axis=1, keepdims=True) + b1_ref[...]
    h = _apply_activation(h, activation)
    # layer 2: g[f] = sum_h W2[f, h] * h[h] + b2[f]           -> (F, 1)
    h_row = h.reshape(1, h.shape[0])                       # tiny sublane->lane relayout
    g = jnp.sum(w2_ref[...] * h_row, axis=1, keepdims=True) + b2_ref[...]
    # exact sigmoid (only F elements once per batch)
    return 1.0 / (1.0 + jnp.exp(-g))


# ---------------------------------------------------------------------------
# Fused single-pass kernel: per-batch slab resident in VMEM, x read once.
# ---------------------------------------------------------------------------
def _fused_kernel(x_ref, w1_ref, b1_ref, w2_ref, b2_ref, o_ref, *,
                  inv_count, activation):
    x = x_ref[...]                                         # (1, C, F, T), input dtype
    # squeeze: sum channels first (pure VPU adds, f32 accumulation, no f32 slab
    # temp), then a single cross-lane (T) reduce on the remaining (F, T) plane.
    csum = jnp.sum(x, axis=1, dtype=jnp.float32)           # (1, F, T)
    mean_row = jnp.sum(csum, axis=-1) * inv_count          # (1, F)
    gate = _mlp_gate(mean_row, w1_ref, b1_ref, w2_ref, b2_ref, activation)  # (F, 1)
    gate = gate.reshape(1, 1, gate.shape[0], 1).astype(o_ref.dtype)
    # excitation in the input dtype: one load -> mul -> store per vreg.
    o_ref[...] = x * gate


# ---------------------------------------------------------------------------
# Two-pass fallback: pass 1 accumulates per-(b, f) sums over channel tiles and
# emits the gate; pass 2 is a pure broadcast-multiply sweep over x.
# ---------------------------------------------------------------------------
def _gate_kernel(x_ref, w1_ref, b1_ref, w2_ref, b2_ref, gate_ref, acc_ref, *,
                 inv_count, activation):
    c = pl.program_id(1)

    @pl.when(c == 0)
    def _():
        acc_ref[...] = jnp.zeros_like(acc_ref)

    # channel-first reduction: f32 accumulation straight off the ref, then a
    # single lane reduce over T (one XLU reduce per tile instead of c_tile).
    csum = jnp.sum(x_ref[...], axis=1, dtype=jnp.float32)  # (1, F, T)
    acc_ref[...] += jnp.sum(csum, axis=-1)                  # (1, F)

    @pl.when(c == pl.num_programs(1) - 1)
    def _():
        gate = _mlp_gate(acc_ref[...] * inv_count, w1_ref, b1_ref, w2_ref,
                         b2_ref, activation)                # (F, 1)
        gate_ref[...] = gate.reshape(gate_ref.shape)        # (1, 1, F, 1): F on sublanes


def _scale_kernel(x_ref, gate_ref, o_ref):
    gate = gate_ref[...].astype(o_ref.dtype)                # (1, 1, F, 1)
    o_ref[...] = x_ref[...] * gate                          # load -> mul -> store


# ---------------------------------------------------------------------------
# Tile selection helpers.
# ---------------------------------------------------------------------------
def _divisors(n):
    return [d for d in range(1, n + 1) if n % d == 0]


def _pick_reduce_tile(n, per_unit_bytes, target_bytes, hard_cap_bytes):
    """Channel tile for the squeeze pass: must divide n exactly (the reduction
    must not see padded rows).  Prefer the largest divisor under the target; if
    that collapses to a tiny tile (awkward n, e.g. prime), take the smallest
    divisor above the target that still fits the hard VMEM cap."""
    best = 1
    for d in _divisors(n):
        if d * per_unit_bytes <= target_bytes:
            best = max(best, d)
    if best * per_unit_bytes * 4 < target_bytes:
        over = [d for d in _divisors(n)
                if target_bytes < d * per_unit_bytes <= hard_cap_bytes]
        if over:
            best = min(over)
    return best


def _pick_elementwise_tile(n, per_unit_bytes, target_bytes):
    """Channel tile for the excitation sweep (pure elementwise, so a partial
    last block is correct).  Prefer an exact divisor near the target; otherwise
    use the target-sized tile with a cdiv grid instead of collapsing to 1."""
    t = int(max(1, min(n, target_bytes // max(per_unit_bytes, 1))))
    best_div = 1
    for d in _divisors(n):
        if d <= t:
            best_div = max(best_div, d)
    if 2 * best_div >= t:
        return best_div
    return t


def frequency_wise_se_block(
        x, w1, b1, w2, b2, m=None, *, activation="relu",
        fused_block_limit_bytes=None,
        allow_single_buffered_fused=True,
        squeeze_tile_target_bytes=None,
        scale_tile_target_bytes=None,
        num_tensorcores=1,
        vmem_capacity_bytes=None):
    """x: (B, C, F, T); w1: (H, F), b1: (H,), w2: (F, H), b2: (F,).

    Mirrors FrequencyWiseSqueezeExcitationBlock.forward(x, m=None).
    """
    if m is not None:
        # TODO(synk): masked / weighted mean path (m is not None) not implemented.
        raise NotImplementedError("mask-weighted mean path is not implemented")

    B, C, F, T = x.shape
    H = w1.shape[0]
    assert w1.shape == (H, F) and w2.shape == (F, H)
    assert b1.shape == (H,) and b2.shape == (F,)

    w1a = jnp.asarray(w1, jnp.float32)                     # (H, F)
    b1a = jnp.asarray(b1, jnp.float32).reshape(H, 1)       # (H, 1)
    w2a = jnp.asarray(w2, jnp.float32)                     # (F, H)
    b2a = jnp.asarray(b2, jnp.float32).reshape(F, 1)       # (F, 1)

    inv_count = 1.0 / float(C * T)                         # static reciprocal -> multiply
    esize = jnp.dtype(x.dtype).itemsize
    cap = (_vmem_capacity_bytes() if vmem_capacity_bytes is None
           else int(vmem_capacity_bytes))

    # Fused path needs ~4x slab (double-buffered in + out) + small headroom.
    fused_limit = (max(0, (cap - (12 << 20)) // 4)
                   if fused_block_limit_bytes is None else fused_block_limit_bytes)
    slab_bytes = C * F * T * esize

    # On a 2-TC part (v7x) a fused grid=(B,) idles a core when B < cores; the
    # two-pass path parallelizes over (B, nc) and wins despite 1.5x traffic.
    prefer_fused = B >= max(1, num_tensorcores)

    fused = False
    single_buffer = False
    if prefer_fused and slab_bytes <= fused_limit:
        fused = True
    elif (prefer_fused and allow_single_buffered_fused
          and slab_bytes <= 2 * fused_limit):
        # v7x-targeted: keep the 2x-HBM-traffic fused path by single-buffering
        # the big x blocks (compute is trivial; read/write share HBM BW anyway).
        fused = True
        single_buffer = True

    if fused:
        if single_buffer:
            x_in_spec = pl.BlockSpec((1, C, F, T), lambda b: (b, 0, 0, 0),
                                     pipeline_mode=pl.Buffered(1))
            x_out_spec = pl.BlockSpec((1, C, F, T), lambda b: (b, 0, 0, 0),
                                      pipeline_mode=pl.Buffered(1))
            buf_bytes = 2 * slab_bytes
        else:
            x_in_spec = pl.BlockSpec((1, C, F, T), lambda b: (b, 0, 0, 0))
            x_out_spec = pl.BlockSpec((1, C, F, T), lambda b: (b, 0, 0, 0))
            buf_bytes = 4 * slab_bytes
        kernel = functools.partial(_fused_kernel, inv_count=inv_count,
                                   activation=activation)
        return pl.pallas_call(
            kernel,
            out_shape=jax.ShapeDtypeStruct((B, C, F, T), x.dtype),
            grid_spec=pltpu.PrefetchScalarGridSpec(
                num_scalar_prefetch=0,
                grid=(B,),
                in_specs=[
                    x_in_spec,
                    pl.BlockSpec((H, F), lambda b: (0, 0)),
                    pl.BlockSpec((H, 1), lambda b: (0, 0)),
                    pl.BlockSpec((F, H), lambda b: (0, 0)),
                    pl.BlockSpec((F, 1), lambda b: (0, 0)),
                ],
                out_specs=x_out_spec),
            compiler_params=_compiler_params(buf_bytes, ("parallel",), cap),
        )(x, w1a, b1a, w2a, b2a)

    # ---- two-pass fallback: channel-tiled squeeze, then excitation sweep ----
    plane_bytes = F * T * esize                            # one (F, T) channel plane

    # Pass 1 (squeeze) only double-buffers its input (gate output is tiny), so
    # give it large blocks: default ~16 MiB, clamped so 2x tile fits VMEM.
    hard_cap = max(plane_bytes, (cap - (16 << 20)) // 2)
    sq_target = squeeze_tile_target_bytes
    if sq_target is None:
        sq_target = min(16 << 20, hard_cap)
    c_tile1 = _pick_reduce_tile(C, plane_bytes, sq_target, hard_cap)
    nc1 = C // c_tile1

    gate_kernel = functools.partial(_gate_kernel, inv_count=inv_count,
                                    activation=activation)
    gate = pl.pallas_call(
        gate_kernel,
        out_shape=jax.ShapeDtypeStruct((B, 1, F, 1), jnp.float32),
        grid_spec=pltpu.PrefetchScalarGridSpec(
            num_scalar_prefetch=0,
            grid=(B, nc1),
            in_specs=[
                pl.BlockSpec((1, c_tile1, F, T), lambda b, c: (b, c, 0, 0)),
                pl.BlockSpec((H, F), lambda b, c: (0, 0)),
                pl.BlockSpec((H, 1), lambda b, c: (0, 0)),
                pl.BlockSpec((F, H), lambda b, c: (0, 0)),
                pl.BlockSpec((F, 1), lambda b, c: (0, 0)),
            ],
            out_specs=pl.BlockSpec((1, 1, F, 1), lambda b, c: (b, 0, 0, 0)),
            scratch_shapes=[pltpu.VMEM((1, F), jnp.float32)]),
        compiler_params=_compiler_params(2 * c_tile1 * plane_bytes,
                                         ("parallel", "arbitrary"), cap),
    )(x, w1a, b1a, w2a, b2a)

    # Pass 2 (excitation) double-buffers input + output: default ~8 MiB blocks;
    # pure elementwise, so a partial last channel tile (cdiv grid) is fine.
    sc_target = scale_tile_target_bytes
    if sc_target is None:
        sc_target = min(8 << 20, max(plane_bytes, (cap - (16 << 20)) // 4))
    c_tile2 = _pick_elementwise_tile(C, plane_bytes, sc_target)
    nc2 = pl.cdiv(C, c_tile2)

    return pl.pallas_call(
        _scale_kernel,
        out_shape=jax.ShapeDtypeStruct((B, C, F, T), x.dtype),
        grid_spec=pltpu.PrefetchScalarGridSpec(
            num_scalar_prefetch=0,
            grid=(B, nc2),
            in_specs=[
                pl.BlockSpec((1, c_tile2, F, T), lambda b, c: (b, c, 0, 0)),
                pl.BlockSpec((1, 1, F, 1), lambda b, c: (b, 0, 0, 0)),
            ],
            out_specs=pl.BlockSpec((1, c_tile2, F, T), lambda b, c: (b, c, 0, 0))),
        compiler_params=_compiler_params(4 * c_tile2 * plane_bytes,
                                         ("parallel", "parallel"), cap),
    )(x, gate)


def _reference(x, w1, b1, w2, b2, activation="relu"):
    """Pure-JAX reference mirroring the PyTorch forward (m=None)."""
    xs = x.astype(jnp.float32)
    mean = xs.mean(axis=(1, 3))                            # (B, F)
    h = mean @ w1.T + b1                                   # (B, H)
    h = jnp.maximum(h, 0.0) if activation == "relu" else jax.nn.gelu(h, approximate=True)
    g = jax.nn.sigmoid(h @ w2.T + b2)                      # (B, F)
    out = xs * g[:, None, :, None]
    return out.astype(x.dtype)


if __name__ == "__main__":
    key = jax.random.PRNGKey(0)
    B, C, F, T = 2, 4, 16, 128        # frequency_bins_num=16
    H = 32                            # hidden_dim=32
    kx, k1, k2, k3, k4 = jax.random.split(key, 5)
    x = jax.random.normal(kx, (B, C, F, T), dtype=jnp.float32)
    w1 = 0.2 * jax.random.normal(k1, (H, F), dtype=jnp.float32)
    b1 = 0.1 * jax.random.normal(k2, (H,), dtype=jnp.float32)
    w2 = 0.2 * jax.random.normal(k3, (F, H), dtype=jnp.float32)
    b2 = 0.1 * jax.random.normal(k4, (F,), dtype=jnp.float32)

    ref = _reference(x, w1, b1, w2, b2)

    # Fused single-pass path (per-batch slab resident in VMEM, x read once).
    out = jax.block_until_ready(frequency_wise_se_block(x, w1, b1, w2, b2))
    assert out.shape == x.shape
    assert jnp.allclose(out, ref, atol=1e-4, rtol=1e-4), "fused kernel mismatch vs reference"

    # Two-pass channel-tiled fallback path (forced via tiny block budgets):
    # 2-channel squeeze tiles (2 accumulation steps) + 2-channel scale tiles.
    plane = F * T * 4
    out2 = jax.block_until_ready(
        frequency_wise_se_block(x, w1, b1, w2, b2,
                                fused_block_limit_bytes=0,
                                squeeze_tile_target_bytes=2 * plane,
                                scale_tile_target_bytes=2 * plane))
    assert jnp.allclose(out2, ref, atol=1e-4, rtol=1e-4), "two-pass kernel mismatch vs reference"

    print("KERNEL_OK")
</pallas_src>

<mosaic_0001>
module attributes {stable_mosaic.version = 11 : i64} {
  func.func @_fused_kernel(%arg0: i32, %arg1: memref<1x4x16x128xf32, #tpu.memory_space<vmem>>, %arg2: memref<32x16xf32, #tpu.memory_space<vmem>>, %arg3: memref<32x1xf32, #tpu.memory_space<vmem>>, %arg4: memref<16x32xf32, #tpu.memory_space<vmem>>, %arg5: memref<16x1xf32, #tpu.memory_space<vmem>>, %arg6: memref<1x4x16x128xf32, #tpu.memory_space<vmem>>) attributes {dimension_semantics = [#tpu.dimension_semantics<parallel>], iteration_bounds = array<i64: 2>, scalar_prefetch = 0 : i64, scratch_operands = 0 : i64, tpu.core_type = #tpu.core_type<tc>, window_params = [{transform_indices = @transform_0, window_bounds = array<i64: 1, 4, 16, 128>}, {pipeline_mode = #tpu.pipeline_mode<synchronous>, transform_indices = @transform_1, window_bounds = array<i64: 32, 16>}, {pipeline_mode = #tpu.pipeline_mode<synchronous>, transform_indices = @transform_2, window_bounds = array<i64: 32, 1>}, {pipeline_mode = #tpu.pipeline_mode<synchronous>, transform_indices = @transform_3, window_bounds = array<i64: 16, 32>}, {pipeline_mode = #tpu.pipeline_mode<synchronous>, transform_indices = @transform_4, window_bounds = array<i64: 16, 1>}, {transform_indices = @transform_5, window_bounds = array<i64: 1, 4, 16, 128>}]} {
    %c0 = arith.constant 0 : index
    %c0_0 = arith.constant 0 : index
    %c0_1 = arith.constant 0 : index
    %c0_2 = arith.constant 0 : index
    %0 = vector.load %arg1[%c0, %c0_0, %c0_1, %c0_2] : memref<1x4x16x128xf32, #tpu.memory_space<vmem>>, vector<1x4x16x128xf32>
    %cst = arith.constant dense<0.000000e+00> : vector<1x16x128xf32>
    %1 = vector.multi_reduction <add>, %0, %cst [1] : vector<1x4x16x128xf32> to vector<1x16x128xf32>
    %cst_3 = arith.constant dense<0.000000e+00> : vector<1x16xf32>
    %2 = vector.multi_reduction <add>, %1, %cst_3 [2] : vector<1x16x128xf32> to vector<1x16xf32>
    %cst_4 = arith.constant 0.001953125 : f32
    %3 = vector.broadcast %cst_4 : f32 to vector<1x16xf32>
    %4 = arith.mulf %2, %3 : vector<1x16xf32>
    %c0_5 = arith.constant 0 : index
    %c0_6 = arith.constant 0 : index
    %5 = vector.load %arg2[%c0_5, %c0_6] : memref<32x16xf32, #tpu.memory_space<vmem>>, vector<32x16xf32>
    %6 = vector.broadcast %4 : vector<1x16xf32> to vector<32x16xf32>
    %7 = arith.mulf %5, %6 : vector<32x16xf32>
    %cst_7 = arith.constant dense<0.000000e+00> : vector<32xf32>
    %8 = vector.multi_reduction <add>, %7, %cst_7 [1] : vector<32x16xf32> to vector<32xf32>
    %9 = vector.shape_cast %8 : vector<32xf32> to vector<32x1xf32>
    %c0_8 = arith.constant 0 : index
    %c0_9 = arith.constant 0 : index
    %10 = vector.load %arg3[%c0_8, %c0_9] : memref<32x1xf32, #tpu.memory_space<vmem>>, vector<32x1xf32>
    %11 = arith.addf %9, %10 : vector<32x1xf32>
    %cst_10 = arith.constant 0.000000e+00 : f32
    %12 = vector.broadcast %cst_10 : f32 to vector<32x1xf32>
    %13 = arith.maximumf %11, %12 : vector<32x1xf32>
    %14 = vector.shape_cast %13 : vector<32x1xf32> to vector<1x32xf32>
    %c0_11 = arith.constant 0 : index
    %c0_12 = arith.constant 0 : index
    %15 = vector.load %arg4[%c0_11, %c0_12] : memref<16x32xf32, #tpu.memory_space<vmem>>, vector<16x32xf32>
    %16 = vector.broadcast %14 : vector<1x32xf32> to vector<16x32xf32>
    %17 = arith.mulf %15, %16 : vector<16x32xf32>
    %cst_13 = arith.constant dense<0.000000e+00> : vector<16xf32>
    %18 = vector.multi_reduction <add>, %17, %cst_13 [1] : vector<16x32xf32> to vector<16xf32>
    %19 = vector.shape_cast %18 : vector<16xf32> to vector<16x1xf32>
    %c0_14 = arith.constant 0 : index
    %c0_15 = arith.constant 0 : index
    %20 = vector.load %arg5[%c0_14, %c0_15] : memref<16x1xf32, #tpu.memory_space<vmem>>, vector<16x1xf32>
    %21 = arith.addf %19, %20 : vector<16x1xf32>
    %cst_16 = arith.constant 0.000000e+00 : f32
    %22 = vector.broadcast %cst_16 : f32 to vector<16x1xf32>
    %23 = arith.subf %22, %21 : vector<16x1xf32>
    %24 = math.exp %23 : vector<16x1xf32>
    %cst_17 = arith.constant 1.000000e+00 : f32
    %25 = vector.broadcast %cst_17 : f32 to vector<16x1xf32>
    %26 = arith.addf %25, %24 : vector<16x1xf32>
    %cst_18 = arith.constant 1.000000e+00 : f32
    %27 = vector.broadcast %cst_18 : f32 to vector<16x1xf32>
    %28 = arith.divf %27, %26 : vector<16x1xf32>
    %29 = vector.shape_cast %28 : vector<16x1xf32> to vector<1x1x16x1xf32>
    %30 = vector.broadcast %29 : vector<1x1x16x1xf32> to vector<1x4x16x128xf32>
    %31 = arith.mulf %0, %30 : vector<1x4x16x128xf32>
    %c0_19 = arith.constant 0 : index
    %c0_20 = arith.constant 0 : index
    %c0_21 = arith.constant 0 : index
    %c0_22 = arith.constant 0 : index
    %32 = vector.load %arg6[%c0_19, %c0_20, %c0_21, %c0_22] : memref<1x4x16x128xf32, #tpu.memory_space<vmem>>, vector<1x4x16x128xf32>
    tpu.vector_store %arg6[%c0_19, %c0_20, %c0_21, %c0_22], %31 {strides = array<i32>} : memref<1x4x16x128xf32, #tpu.memory_space<vmem>>, vector<1x4x16x128xf32>,
    return
  }
  func.func @transform_0(%arg0: i32) -> (i32, i32, i32, i32) {
    %c0_i32 = arith.constant 0 : i32
    %c0_i32_0 = arith.constant 0 : i32
    %c0_i32_1 = arith.constant 0 : i32
    %c0_i32_2 = arith.constant 0 : i32
    return %arg0, %c0_i32, %c0_i32_0, %c0_i32_1 : i32, i32, i32, i32
  }
  func.func @transform_1(%arg0: i32) -> (i32, i32) {
    %c0_i32 = arith.constant 0 : i32
    %c0_i32_0 = arith.constant 0 : i32
    %c0_i32_1 = arith.constant 0 : i32
    return %c0_i32, %c0_i32_0 : i32, i32
  }
  func.func @transform_2(%arg0: i32) -> (i32, i32) {
    %c0_i32 = arith.constant 0 : i32
    %c0_i32_0 = arith.constant 0 : i32
    %c0_i32_1 = arith.constant 0 : i32
    return %c0_i32, %c0_i32_0 : i32, i32
  }
  func.func @transform_3(%arg0: i32) -> (i32, i32) {
    %c0_i32 = arith.constant 0 : i32
    %c0_i32_0 = arith.constant 0 : i32
    %c0_i32_1 = arith.constant 0 : i32
    return %c0_i32, %c0_i32_0 : i32, i32
  }
  func.func @transform_4(%arg0: i32) -> (i32, i32) {
    %c0_i32 = arith.constant 0 : i32
    %c0_i32_0 = arith.constant 0 : i32
    %c0_i32_1 = arith.constant 0 : i32
    return %c0_i32, %c0_i32_0 : i32, i32
  }
  func.func @transform_5(%arg0: i32) -> (i32, i32, i32, i32) {
    %c0_i32 = arith.constant 0 : i32
    %c0_i32_0 = arith.constant 0 : i32
    %c0_i32_1 = arith.constant 0 : i32
    %c0_i32_2 = arith.constant 0 : i32
    return %arg0, %c0_i32, %c0_i32_0, %c0_i32_1 : i32, i32, i32, i32
  }
}

</mosaic_0001>

<bundles_post_ra>
// kernel: tpu_custom_call.1
= control target key start
LH: loop header
LB: loop body
LE: loop exit
PB: predicated region body
PF: predicated region fallthrough
CT: control target
= control target key end

     0   :  { %10 = vsyncpa [#allocation3], 0  ;;  %s956_s0 = inlined_call_operand.hbm [shape: f32[2,4,16,128], index: 0, kind: input, shape index: {}]   ;;  %s957_s1 = inlined_call_operand.vmem [shape: f32[32,16], index: 1, kind: input, shape index: {}]   ;;  %s958_s2 = inlined_call_operand.vmem [shape: f32[32,1], index: 2, kind: input, shape index: {}]   ;;  %s959_s3 = inlined_call_operand.vmem [shape: f32[16,32], index: 3, kind: input, shape index: {}]   ;;  %s960_s4 = inlined_call_operand.vmem [shape: f32[16,1], index: 4, kind: input, shape index: {}]   ;;  %s961_s5 = inlined_call_operand.hbm [shape: f32[2,4,16,128], index: 5, kind: output, shape index: {}]  }
   0x1   :  { %12 = vsyncpa [#allocation3 + $0x1], 0 }
   0x2   :  { %13 = vsyncpa [#allocation4], 0 }
   0x3   :  { %15 = vsyncpa [#allocation4 + $0x1], 0  ;;  %s718_s18 = smov 0   ;;  %s720_s19 = smov 0  }
   0x4   :  { %s722_s20 = smov 0   ;;  %s724_s21 = smov 0  }
   0x5 LB: > { %s739_s22 = sadd.s32 4294967295, %s679_s21   ;;  %s510_s23 = sadd.s32 4294967294, %s679_s21   ;;  %s679_s21 = sphi %s724_s21, %s976_s21   ;;  %s675_s20 = sphi %s722_s20, %s975_s20   ;;  %s671_s19 = sphi %s720_s19, %s974_s19   ;;  %s667_s18 = sphi %s718_s18, %s973_s18  }
   0x6   : > { %s743_s24 = sadd.s32 1, %s679_s21   ;;  %s28_s25 = sadd.s32 1, %s675_s20 }
   0x7   : > { %s25_s26 = ssub.s32 %s679_s21, %s743_s24  ;;  %p35_p0 = scmp.ne.s32.totalorder %s675_s20, %s671_s19 }
   0x8   : > { %p26_p1 = scmp.eq.s32.totalorder %s25_s26, 0  ;;  %p36_p2 = scmp.eq.s32.totalorder %s679_s21, 0 }
   0x9   : > { %p41_p3 = scmp.ne.s32.totalorder %s671_s19, %s667_s18  ;;  %p42_p4 = scmp.eq.s32.totalorder %s739_s22, 0 }
   0xa   : > { %s755_s27 = scalar_select %p26_p1, %s675_s20, %s28_s25  }
   0xb   : > { %p757_p5 = por %p36_p2, %p35_p0  ;;  %p761_p6 = por %p42_p4, %p41_p3 }
   0xc   : > { %p149_p7 = scmp.eq.s32.totalorder %s739_s22, 1  ;;  %p155_p8 = scmp.eq.s32.totalorder %s510_s23, 1 }
   0xd   : > { %s965_s29 = scalar_select %p761_p6, 1, 0 }
   0xe   : > { %p538_p10 = scmp.lt.s32.totalorder %s679_s21, 2  ;;  %p768_p11 = por %p149_p7, %p35_p0 }
   0xf   : > { %p772_p12 = por %p155_p8, %p41_p3  ;;  %s187_s7 = sand.u32 1, %s675_s20  }
  0x10   : > { %s966_s30 = scalar_select %p768_p11, 1, 0 }
  0x11   : > { %s967_s6 = scalar_select %p772_p12, 1, 0 }
  0x12   : > { %s524_s8 = sshll.u32 %s679_s21, 10  ;;  %s513_s9 = sshll.u32 %s187_s7, 6 }
  0x13   : > { %s781_s12 = scalar_lea.hbm %s956_s0, %s524_s8  ;;  %s191_s13 = scalar_lea.vmem [#allocation2], %s513_s9 }
  0x14   : > { %s198_s14 = sshll.u32 %s191_s13, 4  ;;  %p785_p13 = pnand %p538_p10, %p757_p5  ;;  %s789_s14 = int_to_ptr.vmem [resolvable:$true] %s198_s14 }
  0x15   : > { %s791_s16 = scalar_lea.sflag [#allocation3], %s187_s7  ;;  %s587_s17 = scalar_lea.hbm %s781_s12, 1024 }
  0x16   : > { %p588_p0 = scmp.ne.s32.totalorder %s781_s12, %s587_s17  ;;  %p589_p1 = pneg %p785_p13 }
  0x17   : > { %s592_s26 = scalar_lea.hbm %s956_s0, 2048  ;;  %p593_p4 = scmp.lt.s32.totalorder %s781_s12, %s956_s0 }
  0x18   : > { %p590_p2 = pnand %p589_p1, %p588_p0  ;;  %p594_p5 = scmp.lt.s32.totalorder %s592_s26, %s587_s17 }
  0x1a   : > { %p591_p3 = pneg %p590_p2  ;;  %p595_p7 = por %p594_p5, %p593_p4 }
  0x1c   : > { %p596_p8 = pnand %p595_p7, %p591_p3 }
  0x1e   : > { %599 = shalt.err (!%p596_p8)
}
  0x1f   : > { %s600_s7 = scalar_lea.vmem %s789_s14, 1024  ;;  %s681_s9 = smov [#allocation2]  }
  0x20   : > { %p601_p10 = scmp.ne.s32.totalorder %s789_s14, %s600_s7  ;;  %s605_s10 = sshll.u32 %s681_s9, 4  ;;  %s606_s10 = int_to_ptr.vmem [resolvable:$false] %s605_s10 }
  0x21   : > { %s607_s11 = scalar_lea.vmem %s606_s10, 2048  ;;  %p608_p2 = scmp.lt.s32.totalorder %s789_s14, %s606_s10 }
  0x22   : > { %p603_p9 = pnand %p601_p10, %p589_p1  ;;  %p609_p12 = scmp.lt.s32.totalorder %s607_s11, %s600_s7 }
  0x24   : > { %p604_p0 = pneg %p603_p9  ;;  %p610_p11 = por %p609_p12, %p608_p2 }
  0x26   : > { %p611_p6 = pnand %p610_p11, %p604_p0 }
  0x28   : > { %614 = shalt.err (!%p611_p6)
}
  0x29   : > { %s682_s13 = smov 128   ;;  %s683_s17 = smov 8  }
  0x2a   : > { %533 = dma.hbm_to_vmem [thread:$0]  (!%p785_p13), %s781_s12, 1024, %s789_s14, %s791_s16, %s682_s13, %s682_s13, %s683_s17  }
  0x2b   : > { %p516_p9 = scmp.ge.s32.totalorder %s679_s21, 1  ;;  %p206_p1 = scmp.lt.s32.totalorder %s679_s21, 3 }
  0x2d   : > { %p207_p3 = pnand %p516_p9, %p206_p1 }
  0x2e   : > { %s815_s23 = sand.u32 (!%p207_p3), 1, %s671_s19   ;;  %p969_p6 = scmp.ne.s32.totalorder (!%p207_p3), %s965_s29, 0 }
  0x2f   : > { %210 = sbr.rel (%p207_p3) target bundleno = 811 (0x32b), region = 40  ;;  %s517_s25 = sshll.u32 (!%p207_p3), %s815_s23, 6 }
  0x30   : > { %s213_s26 = scalar_lea.sflag (!%p207_p3), [#allocation3], %s815_s23  ;;  %s216_s28 = scalar_lea.vmem (!%p207_p3), [#allocation2], %s517_s25 }
  0x34   : > { %658 = dma.done.wait (%p969_p6), %s213_s26, 1024  }
  0x35   : > { %660 = vsyncadd (%p969_p6), %s213_s26, 4294966272  ;;  %v825_v0 = vld [vmem:[%s216_s28] sm:$0xff]  ;;  %v827_v1 = vld [vmem:[%s216_s28 + $0x10] sm:$0xff]  ;;  %v269_v14 = vlaneseq  ;;  %vm280_vm0 = vcmask 130112   ;;  %vm299_vm1 = vcmask 130048   ;;  %v684_v39 = vmov 0  }
  0x36   : > { %v829_v2 = vld [vmem:[%s216_s28 + $0x20] sm:$0xff]  ;;  %v251_v3 = vadd.f32 %v827_v1, %v825_v0  ;;  %v833_v4 = vld [vmem:[%s216_s28 + $0x8] sm:$0xff]  ;;  %v835_v5 = vld [vmem:[%s216_s28 + $0x18] sm:$0xff]  ;;  %577 = vset.pattern.permute.xlu0 %v684_v39  ;;  %578 = vset.pattern.permute.xlu1 %v684_v39  ;;  %vm356_vm2 = vcmask 195712   ;;  %vm363_vm3 = vcmask 261312   ;;  %vm374_vm4 = vcmask 261120  }
  0x37   : > { %v837_v6 = vld [vmem:[%s216_s28 + $0x30] sm:$0xff]  ;;  %v839_v7 = vld [vmem:[%s216_s28 + $0x28] sm:$0xff]  ;;  %v254_v8 = vadd.f32 %v835_v5, %v833_v4  ;;  %v844_v10 = vld [vmem:[%s216_s28 + $0x38] sm:$0xff]  ;;  %v270_v15 = vand.u32 127, %v269_v14  ;;  %v849_v16 = vshrl.u32 %v269_v14, 7  ;;  %s242_s13 = scalar_lea.vmem [#allocation5], %s517_s25 }
  0x38   : > { %v252_v9 = vadd.f32 %v251_v3, %v829_v2  ;;  %v265_v26 = vld [vmem:[%s957_s1 + $0x10] sm:$0xff]  ;;  %v263_v27 = vld [vmem:[%s957_s1] sm:$0xff]  ;;  %v264_v29 = vld [vmem:[%s957_s1 + $0x8] sm:$0xff]  ;;  %s437_s17 = sshll.u32 %s242_s13, 4  ;;  %s525_s26 = sshll.u32 %s739_s22, 10  ;;  %s909_s17 = int_to_ptr.vmem [resolvable:$true] %s437_s17 }
  0x39   : > { %v255_v11 = vadd.f32 %v254_v8, %v839_v7  ;;  %v275_v17 = vadd.s32 4294967288, %v270_v15  ;;  %v852_v19 = vsub.s32 %v270_v15, %v849_v16  ;;  %v266_v35 = vld [vmem:[%s957_s1 + $0x18] sm:$0xff]  ;;  %v312_v40 = vld [vmem:[%s958_s2] sm:$0xff]  ;;  %v313_v43 = vld [vmem:[%s958_s2 + $0x8] sm:$0xff]  ;;  %v351_v56 = vadd.s32 4294967280, %v270_v15  ;;  %s907_s12 = scalar_lea.hbm %s961_s5, %s525_s26  ;;  %s424_s22 = scalar_lea.sflag [#allocation4], %s815_s23 }
  0x3a   : > { %v253_v12 = vadd.f32 %v252_v9, %v837_v6  ;;  %v314_v45 = vld [vmem:[%s958_s2 + $0x10] sm:$0xff]  ;;  %v315_v51 = vld [vmem:[%s958_s2 + $0x18] sm:$0xff]  ;;  %v358_v58 = vadd.s32 4294967272, %v270_v15  ;;  %v324_v14 = vld [vmem:[%s959_s3] sm:$0xff]  ;;  %s615_s25 = scalar_lea.vmem %s909_s17, 1024  ;;  %p970_p12 = scmp.ne.s32.totalorder %s966_s30, 0 }
  0x3b   : > { %v256_v13 = vadd.f32 %v255_v11, %v844_v10  ;;  %v278_v21 = vsub.s32 %v275_v17, %v849_v16  ;;  %v354_v59 = vsub.s32 %v351_v56, %v849_v16  ;;  %p616_p11 = scmp.ne.s32.totalorder %s909_s17, %s615_s25  ;;  %s685_s14 = smov [#allocation5]  }
  0x3c   : > { %257 = vadd.xlane.f32.xlu0 %v253_v12  ;;  %v361_v63 = vsub.s32 %v358_v58, %v849_v16  ;;  %s619_s15 = sshll.u32 %s685_s14, 4  ;;  %s620_s15 = int_to_ptr.vmem [resolvable:$false] %s619_s15 }
  0x3d   : > { %p617_p13 = pnand %p616_p11, %p970_p12  ;;  %s621_s16 = scalar_lea.vmem %s620_s15, 2048 }
  0x3e   : > { %p622_p5 = scmp.lt.s32.totalorder %s909_s17, %s620_s15  ;;  %p623_p7 = scmp.lt.s32.totalorder %s621_s16, %s615_s25 }
  0x3f   : > { %p618_p4 = pneg %p617_p13 }
  0x40   : > { %259 = vadd.xlane.f32.xlu0 %v256_v13  ;;  %v325_v13 = vld [vmem:[%s959_s3 + $0x8] sm:$0xff]  ;;  %p624_p8 = por %p623_p7, %p622_p5 }
  0x42   : > { %p625_p10 = pnand %p624_p8, %p618_p4 }
  0xc5   : > { %v258_v18 = vpop.xlane.xlu0 %257 }
  0xc6   : > { %v261_v20 = vmul.f32 0.001953125, %v258_v18 }
  0xc8   : > { %v274_v24 = vrot.slane %v261_v20, %v852_v19 }
  0xc9   : > { %v260_v22 = vpop.xlane.xlu0 %259 }
  0xca   : > { %v262_v23 = vmul.f32 0.001953125, %v260_v22  ;;  %v381_v22 = vld [vmem:[%s960_s4] sm:$0xff] }
  0xcc   : > { %v279_v25 = vrot.slane %v262_v23, %v278_v21 }
  0xce   : > { %v281_v28 = vsel %vm280_vm0, %v279_v25, %v274_v24 }
  0xcf   : > { %v297_v30 = vmul.f32 %v281_v28, %v265_v26  ;;  %v295_v31 = vmul.f32 %v281_v28, %v263_v27  ;;  %v296_v34 = vmul.f32 %v281_v28, %v264_v29  ;;  %v298_v37 = vmul.f32 %v281_v28, %v266_v35 }
  0xd1   : > { %v306_v32 = vsel %vm299_vm1, %v297_v30, 0.0  ;;  %v300_v33 = vsel %vm299_vm1, %v295_v31, 0.0  ;;  %v303_v36 = vsel %vm299_vm1, %v296_v34, 0.0  ;;  %v309_v38 = vsel %vm299_vm1, %v298_v37, 0.0 }
  0xd2   : > { %307 = vadd.xlane.f32.xlu0 %v306_v32  ;;  %301 = vadd.xlane.f32.xlu1 %v300_v33 }
  0xd6   : > { %304 = vadd.xlane.f32.xlu1 %v303_v36 }
  0xda   : > { %310 = vadd.xlane.f32.xlu1 %v309_v38 }
 0x15b   : > { %v302_v41 = vpop.xlane.xlu1 %301  ;;  %v308_v46 = vpop.xlane.xlu0 %307 }
 0x15c   : > { %v316_v42 = vadd.f32 %v312_v40, %v302_v41  ;;  %v318_v49 = vadd.f32 %v314_v45, %v308_v46 }
 0x15e   : > { %v320_v44 = vmax.f32 %v316_v42, 0.0  ;;  %v322_v53 = vmax.f32 %v318_v49, 0.0 }
 0x15f   : > { %v305_v47 = vpop.xlane.xlu1 %304 }
 0x160   : > { %v317_v48 = vadd.f32 %v313_v43, %v305_v47  ;;  %331 = vperm.xlu0 %577, %v320_v44  }
 0x162   : > { %v321_v50 = vmax.f32 %v317_v48, 0.0 }
 0x163   : > { %v311_v52 = vpop.xlane.xlu1 %310 }
 0x164   : > { %334 = vperm.xlu1 %578, %v321_v50   ;;  %v319_v54 = vadd.f32 %v315_v51, %v311_v52 }
 0x166   : > { %v323_v55 = vmax.f32 %v319_v54, 0.0 }
 0x168   : > { %337 = vperm.xlu1 %578, %v322_v53  }
 0x16c   : > { %340 = vperm.xlu1 %578, %v323_v55  }
 0x1db   : > { %v332_v60 = vpop.permute.xlu0 %331 }
 0x1dc   : > { %v345_v8 = vrot.slane %v332_v60, %v852_v19 }
 0x1df   : > { %v335_v57 = vpop.permute.xlu1 %334 }
 0x1e0   : > { %v349_v62 = vrot.slane %v335_v57, %v278_v21  ;;  %v382_v21 = vld [vmem:[%s960_s4 + $0x8] sm:$0xff] }
 0x1e2   : > { %v350_v11 = vsel %vm280_vm0, %v349_v62, %v345_v8 }
 0x1e3   : > { %v338_v61 = vpop.permute.xlu1 %337 }
 0x1e4   : > { %v355_v3 = vrot.slane %v338_v61, %v354_v59 }
 0x1e6   : > { %v357_v15 = vsel %vm356_vm2, %v355_v3, %v350_v11 }
 0x1e7   : > { %v341_v9 = vpop.permute.xlu1 %340 }
 0x1e8   : > { %v362_v12 = vrot.slane %v341_v9, %v361_v63 }
 0x1ea   : > { %v364_v17 = vsel %vm363_vm3, %v362_v12, %v357_v15 }
 0x1eb   : > { %v373_v16 = vmul.f32 %v364_v17, %v325_v13  ;;  %v372_v18 = vmul.f32 %v364_v17, %v324_v14 }
 0x1ed   : > { %v378_v19 = vsel %vm374_vm4, %v373_v16, 0.0  ;;  %v375_v20 = vsel %vm374_vm4, %v372_v18, 0.0 }
 0x1ee   : > { %379 = vadd.xlane.f32.xlu0 %v378_v19  ;;  %376 = vadd.xlane.f32.xlu1 %v375_v20 }
 0x277   : > { %v380_v23 = vpop.xlane.xlu0 %379  ;;  %v377_v24 = vpop.xlane.xlu1 %376 }
 0x278   : > { %v384_v25 = vadd.f32 %v382_v21, %v380_v23  ;;  %v383_v26 = vadd.f32 %v381_v22, %v377_v24 }
 0x27a   : > { %v386_v27 = vsub.f32 0.0, %v384_v25  ;;  %v385_v28 = vsub.f32 0.0, %v383_v26 }
 0x27c   : > { %v389_v29 = vmul.f32 1.442695, %v386_v27  ;;  %v387_v30 = vmul.f32 1.442695, %v385_v28 }
 0x27e   : > { %579 = vpow2.f32 %v389_v29 }
 0x27f   : > { %581 = vpow2.f32 %v387_v30 }
 0x28b   : > { %v580_v31 = vpop.eup %579 }
 0x28c   : > { %v582_v32 = vpop.eup %581  ;;  %v392_v33 = vadd.f32 1.0, %v580_v31 }
 0x28d   : > { %v391_v34 = vadd.f32 1.0, %v582_v32 }
 0x28e   : > { %583 = vrcp.f32 %v392_v33 }
 0x28f   : > { %585 = vrcp.f32 %v391_v34 }
 0x29b   : > { %v584_v35 = vpop.eup %583 }
 0x29c   : > { %v586_v36 = vpop.eup %585  ;;  %404 = vperm.xlu0 %577, %v584_v35  }
 0x29d   : > { %399 = vperm.xlu1 %578, %v586_v36  }
 0x317   : > { %v405_v37 = vpop.permute.xlu0 %404 }
 0x318   : > { %v408_v38 = vmul.f32 %v405_v37, %v833_v4  ;;  %v410_v39 = vmul.f32 %v405_v37, %v835_v5  ;;  %v412_v40 = vmul.f32 %v405_v37, %v839_v7  ;;  %v414_v41 = vmul.f32 %v405_v37, %v844_v10  ;;  %v400_v42 = vpop.permute.xlu1 %399 }
 0x319   : > { %v407_v4 = vmul.f32 %v400_v42, %v825_v0  ;;  %v409_v5 = vmul.f32 %v400_v42, %v827_v1  ;;  %v411_v7 = vmul.f32 %v400_v42, %v829_v2  ;;  %v413_v10 = vmul.f32 %v400_v42, %v837_v6 }
 0x31a   : > { %416 = vst [vmem:[%s242_s13 + $0x8] sm:$0xff] %v408_v38  ;;  %418 = vst [vmem:[%s242_s13 + $0x18] sm:$0xff] %v410_v39 }
 0x31b   : > { %420 = vst [vmem:[%s242_s13 + $0x28] sm:$0xff] %v412_v40  ;;  %422 = vst [vmem:[%s242_s13 + $0x38] sm:$0xff] %v414_v41 }
 0x31c   : > { %415 = vst [vmem:[%s242_s13] sm:$0xff] %v407_v4  ;;  %417 = vst [vmem:[%s242_s13 + $0x10] sm:$0xff] %v409_v5 }
 0x31d   : > { %419 = vst [vmem:[%s242_s13 + $0x20] sm:$0xff] %v411_v7  ;;  %421 = vst [vmem:[%s242_s13 + $0x30] sm:$0xff] %v413_v10 }
 0x31e   : > { %628 = shalt.err (!%p625_p10)
}
 0x31f   : > { %s629_s8 = scalar_lea.hbm %s907_s12, 1024  ;;  %s633_s10 = scalar_lea.hbm %s961_s5, 2048 }
 0x320   : > { %p630_p0 = scmp.ne.s32.totalorder %s907_s12, %s629_s8  ;;  %p634_p1 = scmp.lt.s32.totalorder %s907_s12, %s961_s5 }
 0x321   : > { %p635_p3 = scmp.lt.s32.totalorder %s633_s10, %s629_s8 }
 0x322   : > { %p631_p2 = pnand %p630_p0, %p970_p12 }
 0x323   : > { %p636_p6 = por %p635_p3, %p634_p1 }
 0x324   : > { %p632_p9 = pneg %p631_p2 }
 0x326   : > { %p637_p11 = pnand %p636_p6, %p632_p9 }
 0x328   : > { %640 = shalt.err (!%p637_p11)
}
 0x329   : > { %s686_s26 = smov 128   ;;  %s687_s28 = smov 8  }
 0x32a   : > { %528 = dma.vmem_to_hbm [thread:$0]  (%p970_p12), %s909_s17, 1024, %s907_s12, %s424_s22, %s686_s26, %s686_s26, %s687_s28  }
 0x32b PF: > { %s452_s29 = sand.u32 1, %s667_s18   ;;  %p971_p13 = scmp.ne.s32.totalorder %s967_s6, 0 }
 0x32c   : > { %p972_p4 = scmp.ge.s32.totalorder %s679_s21, 2  ;;  %s453_s25 = scalar_lea.sflag [#allocation4], %s452_s29 }
 0x32e   : > { %p535_p5 = pnand %p972_p4, %p971_p13 }
 0x330   : > { %p536_p7 = pneg %p535_p5 }
 0x332   : > { %662 = dma.done.wait (%p536_p7), %s453_s25, 1024  }
 0x333   : > { %664 = vsyncadd (%p536_p7), %s453_s25, 4294966272  ;;  %p18_p8 = scmp.ge.s32.totalorder %s743_s24, 4   ;;  %s973_s18 = smov %s671_s19 }
 0x334   : > { %s974_s19 = smov %s675_s20  ;;  %s975_s20 = smov %s755_s27 }
 0x335   : > { %s976_s21 = smov %s743_s24  ;;  %20 = sbr.rel (!%p18_p8) target bundleno = 5 (0x5), region = 85 }
 0x33a   :  { %458 = vsyncpa [#allocation3], 1 }
 0x33b   :  { %460 = vsyncpa [#allocation3 + $0x1], 1 }
 0x33c   :  { %461 = vsyncpa [#allocation4], 1 }
 0x33d   :  { %463 = vsyncpa [#allocation4 + $0x1], 1 }

</bundles_post_ra>
